<compile_context>
chip_gen: v6e
topology: v6e:2x2x1
jax: 0.10.0
libtpu: 0.0.40
codegen_flags: <defaults>
</compile_context>

<pallas_src>
import functools

import jax
import jax.numpy as jnp
from jax.experimental import pallas as pl
from jax.experimental.pallas import tpu as pltpu


def _round_up(v, m):
    return (v + m - 1) // m * m


def _default_num_shards():
    # 2 TensorCores per chip only on v7x; v5e/v6e are single-TC.
    try:
        kind = jax.devices()[0].device_kind.lower()
    except Exception:
        return 1
    return 2 if "v7" in kind else 1


def _vmem_limit_bytes():
    # Budget ~75% of physical VMEM, capped; conservative 64 MiB fallback
    # (v7x per-TC VMEM) if the query is unavailable.
    try:
        cap = int(pltpu.get_tpu_info().vmem_capacity_bytes)
    except Exception:
        cap = 64 * 1024 * 1024
    return max(32 * 1024 * 1024, min(cap * 3 // 4, 100 * 1024 * 1024))


def _mean_kernel(x_ref, o_ref, acc_ref, *, tile_n, rows_per_shard, n_valid):
    s = pl.program_id(0)
    t = pl.program_id(1)

    @pl.when(t == 0)
    def _init():
        acc_ref[...] = jnp.zeros_like(acc_ref)

    row0 = s * rows_per_shard + t * tile_n
    full = row0 + tile_n <= n_valid

    @pl.when(full)
    def _full_tile():
        acc_ref[...] += jnp.sum(x_ref[...].astype(jnp.float32), axis=0,
                                keepdims=True)

    @pl.when(jnp.logical_not(full))
    def _partial_tile():
        xv = x_ref[...].astype(jnp.float32)
        row = row0 + jax.lax.broadcasted_iota(jnp.int32, xv.shape, 0)
        xv = jnp.where(row < n_valid, xv, 0.0)
        acc_ref[...] += jnp.sum(xv, axis=0, keepdims=True)

    @pl.when(t == pl.num_programs(1) - 1)
    def _finalize():
        o_ref[...] = acc_ref[...][None]                      # (1, 1, D)


def _minmax_kernel(x_ref, w_ref, o_ref, acc_ref, *,
                   mode, tile_n, rows_per_shard, n_valid):
    s = pl.program_id(0)
    t = pl.program_id(1)
    pad_val = jnp.inf if mode == "min" else -jnp.inf

    @pl.when(t == 0)
    def _init():
        acc_ref[...] = jnp.full_like(acc_ref, pad_val)

    row0 = s * rows_per_shard + t * tile_n
    full = row0 + tile_n <= n_valid

    # (TILE_N, P) scores for this slab of samples.
    scores = jnp.dot(x_ref[...], w_ref[...], preferred_element_type=jnp.float32)

    def _reduce(vals):
        if mode == "min":
            acc_ref[...] = jnp.minimum(acc_ref[...],
                                       jnp.min(vals, axis=0, keepdims=True))
        else:
            acc_ref[...] = jnp.maximum(acc_ref[...],
                                       jnp.max(vals, axis=0, keepdims=True))

    @pl.when(full)
    def _full_tile():
        _reduce(scores)

    @pl.when(jnp.logical_not(full))
    def _partial_tile():
        row = row0 + jax.lax.broadcasted_iota(jnp.int32, scores.shape, 0)
        _reduce(jnp.where(row < n_valid, scores, pad_val))

    @pl.when(t == pl.num_programs(1) - 1)
    def _finalize():
        o_ref[...] = acc_ref[...][None]                      # (1, 1, P)


def ensemble_forward(x, W, b, mode="mean", *, tile_n=None, num_shards=None,
                     compute_dtype=None):
    """x: (N, D), W: (D, P), b: (1, P) -> (P,) float32 aggregated scores."""
    if mode not in ("mean", "min", "max"):
        raise Exception("Unknown aggregation mode: " + mode)

    N, D = x.shape
    P = W.shape[1]

    # NOTE: casting here adds a full HBM read+write of x before the kernel;
    # only use compute_dtype if x cannot be supplied narrow end-to-end.
    if compute_dtype is not None and x.dtype != jnp.dtype(compute_dtype):
        x = x.astype(compute_dtype)
    if compute_dtype is not None and mode != "mean":
        W = W.astype(compute_dtype)

    itemsize = jnp.dtype(x.dtype).itemsize
    pack = {4: 8, 2: 16, 1: 32}.get(itemsize, 8)   # sublane packing per dtype

    vmem_limit = _vmem_limit_bytes()
    d_pad = _round_up(D, 128)                      # lane-padded VMEM footprint
    row_bytes = d_pad * itemsize

    if tile_n is None:
        if mode == "mean":
            w_vmem = 0
        else:
            w_vmem = (2 * _round_up(D, 8) * _round_up(P, 128)
                      * jnp.dtype(W.dtype).itemsize)          # double-buffered W
        fixed = w_vmem + 8 * d_pad * 4 + (2 << 20)            # scratch/out/slack
        per_buf = max(row_bytes * pack, (vmem_limit - fixed) // 2)
        tile_n = per_buf // row_bytes
    tile_n = max(pack, (int(tile_n) // pack) * pack)
    tile_n = min(tile_n, _round_up(N, pack))

    tiles_total = -(-N // tile_n)
    if num_shards is None:
        num_shards = _default_num_shards()
    num_shards = max(1, min(int(num_shards), tiles_total))
    tiles_per_shard = -(-tiles_total // num_shards)
    rows_per_shard = tiles_per_shard * tile_n

    # Clamp so no block starts past the end of x; fully out-of-range grid
    # steps re-read the last real tile and are entirely masked in-kernel.
    def x_index_map(s, t):
        return (jnp.minimum(s * tiles_per_shard + t, tiles_total - 1), 0)

    if mode == "mean":
        kernel = functools.partial(_mean_kernel, tile_n=tile_n,
                                   rows_per_shard=rows_per_shard, n_valid=N)
        in_specs = [pl.BlockSpec((tile_n, D), x_index_map)]
        operands = (x,)
        out_cols = D
        scratch = pltpu.VMEM((1, D), jnp.float32)
        flops = 2 * N * D
        bytes_accessed = N * D * itemsize + num_shards * D * 4
    else:
        kernel = functools.partial(_minmax_kernel, mode=mode, tile_n=tile_n,
                                   rows_per_shard=rows_per_shard, n_valid=N)
        in_specs = [pl.BlockSpec((tile_n, D), x_index_map),
                    pl.BlockSpec((D, P), lambda s, t: (0, 0))]
        operands = (x, W)
        out_cols = P
        scratch = pltpu.VMEM((1, P), jnp.float32)
        flops = 2 * N * D * P
        bytes_accessed = (N * D * itemsize
                          + D * P * jnp.dtype(W.dtype).itemsize
                          + num_shards * P * 4)

    partials = pl.pallas_call(
        kernel,
        out_shape=jax.ShapeDtypeStruct((num_shards, 1, out_cols), jnp.float32),
        grid_spec=pltpu.PrefetchScalarGridSpec(
            num_scalar_prefetch=0,
            grid=(num_shards, tiles_per_shard),
            in_specs=in_specs,
            out_specs=pl.BlockSpec((1, 1, out_cols), lambda s, t: (s, 0, 0)),
            scratch_shapes=[scratch],
        ),
        compiler_params=pltpu.CompilerParams(
            dimension_semantics=("parallel", "arbitrary"),
            vmem_limit_bytes=vmem_limit,
        ),
        cost_estimate=pl.CostEstimate(flops=int(flops), transcendentals=0,
                                      bytes_accessed=int(bytes_accessed)),
    )(*operands)

    partials = partials[:, 0, :]                     # (num_shards, out_cols)
    bias = b.reshape(-1).astype(jnp.float32)
    if mode == "mean":
        col_sum = jnp.sum(partials, axis=0)          # (D,) = sum_n x[n, :]
        return (col_sum @ W.astype(jnp.float32)) / N + bias
    if mode == "min":
        return jnp.min(partials, axis=0) + bias
    return jnp.max(partials, axis=0) + bias


def ensemble_reference(x, W, b, mode="mean"):
    # Pure-JAX reference mirroring the PyTorch module literally:
    # stack per-predictor outputs -> (P, N), aggregate over dim=1.
    preds = jnp.stack([x @ W[:, i] + b[0, i] for i in range(W.shape[1])], axis=0)
    if mode == "mean":
        return jnp.mean(preds, axis=1)
    elif mode == "max":
        return jnp.max(preds, axis=1)
    else:
        return jnp.min(preds, axis=1)


if __name__ == "__main__":
    # Small deterministic setup: N=8 samples, D=32 features, P=4 predictors.
    N, D, P = 8, 32, 4
    key = jax.random.PRNGKey(0)
    kx, kw, kb = jax.random.split(key, 3)
    x = jax.random.normal(kx, (N, D), dtype=jnp.float32)
    W = jax.random.normal(kw, (D, P), dtype=jnp.float32) * 0.1
    b = jax.random.normal(kb, (1, P), dtype=jnp.float32) * 0.1

    N2 = 200
    x2 = jax.random.normal(kx, (N2, D), dtype=jnp.float32)

    configs = [
        (x, {}),                                 # single tile, auto sizing
        (x2, {"tile_n": 64}),                    # multi-tile, masked last tile
        (x2, {"tile_n": 48, "num_shards": 2}),   # sharded + odd tile count
        (x2, {}),                                # auto tile sizing, larger N
    ]

    ok = True
    for xin, cfg in configs:
        for mode in ("mean", "min", "max"):
            out = jax.block_until_ready(
                ensemble_forward(xin, W, b, mode=mode, **cfg))
            ref = ensemble_reference(xin, W, b, mode=mode)
            if not jnp.allclose(out, ref, atol=1e-4, rtol=1e-4):
                ok = False
                print(f"MISMATCH mode={mode} cfg={cfg}: {out} vs {ref}")

    if ok:
        print("KERNEL_OK")
</pallas_src>

<mosaic_0001>
module attributes {stable_mosaic.version = 11 : i64} {
  func.func @_mean_kernel(%arg0: i32, %arg1: i32, %arg2: memref<8x32xf32, #tpu.memory_space<vmem>>, %arg3: memref<1x1x32xf32, #tpu.memory_space<vmem>>, %arg4: memref<1x32xf32, #tpu.memory_space<vmem>>) attributes {dimension_semantics = [#tpu.dimension_semantics<parallel>, #tpu.dimension_semantics<arbitrary>], iteration_bounds = array<i64: 1, 1>, scalar_prefetch = 0 : i64, scratch_operands = 1 : i64, tpu.core_type = #tpu.core_type<tc>, window_params = [{transform_indices = @transform_0, window_bounds = array<i64: 8, 32>}, {transform_indices = @transform_1, window_bounds = array<i64: 1, 1, 32>}]} {
    %c0_i32 = arith.constant 0 : i32
    %0 = arith.cmpi eq, %arg1, %c0_i32 : i32
    %1 = arith.extui %0 : i1 to i32
    %c0_i32_0 = arith.constant 0 : i32
    %2 = arith.cmpi ne, %1, %c0_i32_0 : i32
    scf.if %2 {
      %cst = arith.constant 0.000000e+00 : f32
      %16 = vector.broadcast %cst : f32 to vector<1x32xf32>
      %c0 = arith.constant 0 : index
      %c0_8 = arith.constant 0 : index
      %17 = vector.load %arg4[%c0, %c0_8] : memref<1x32xf32, #tpu.memory_space<vmem>>, vector<1x32xf32>
      tpu.vector_store %arg4[%c0, %c0_8], %16 {strides = array<i32>} : memref<1x32xf32, #tpu.memory_space<vmem>>, vector<1x32xf32>,
    } else {
    }
    %c8_i32 = arith.constant 8 : i32
    %3 = arith.muli %arg0, %c8_i32 : i32
    %c8_i32_1 = arith.constant 8 : i32
    %4 = arith.muli %arg1, %c8_i32_1 : i32
    %5 = arith.addi %3, %4 : i32
    %c8_i32_2 = arith.constant 8 : i32
    %6 = arith.addi %5, %c8_i32_2 : i32
    %c8_i32_3 = arith.constant 8 : i32
    %7 = arith.cmpi sle, %6, %c8_i32_3 : i32
    %8 = arith.extui %7 : i1 to i32
    %c0_i32_4 = arith.constant 0 : i32
    %9 = arith.cmpi ne, %8, %c0_i32_4 : i32
    scf.if %9 {
      %c0 = arith.constant 0 : index
      %c0_8 = arith.constant 0 : index
      %16 = vector.load %arg4[%c0, %c0_8] : memref<1x32xf32, #tpu.memory_space<vmem>>, vector<1x32xf32>
      %c0_9 = arith.constant 0 : index
      %c0_10 = arith.constant 0 : index
      %17 = vector.load %arg2[%c0_9, %c0_10] : memref<8x32xf32, #tpu.memory_space<vmem>>, vector<8x32xf32>
      %cst = arith.constant dense<0.000000e+00> : vector<32xf32>
      %18 = vector.multi_reduction <add>, %17, %cst [0] : vector<8x32xf32> to vector<32xf32>
      %19 = vector.shape_cast %18 : vector<32xf32> to vector<1x32xf32>
      %20 = arith.addf %16, %19 : vector<1x32xf32>
      %c0_11 = arith.constant 0 : index
      %c0_12 = arith.constant 0 : index
      %21 = vector.load %arg4[%c0_11, %c0_12] : memref<1x32xf32, #tpu.memory_space<vmem>>, vector<1x32xf32>
      tpu.vector_store %arg4[%c0_11, %c0_12], %20 {strides = array<i32>} : memref<1x32xf32, #tpu.memory_space<vmem>>, vector<1x32xf32>,
    } else {
    }
    %true = arith.constant true
    %10 = arith.xori %7, %true : i1
    %11 = arith.extui %10 : i1 to i32
    %c0_i32_5 = arith.constant 0 : i32
    %12 = arith.cmpi ne, %11, %c0_i32_5 : i32
    scf.if %12 {
      %c0 = arith.constant 0 : index
      %c0_8 = arith.constant 0 : index
      %16 = vector.load %arg2[%c0, %c0_8] : memref<8x32xf32, #tpu.memory_space<vmem>>, vector<8x32xf32>
      %17 = tpu.iota {dimensions = array<i32: 0>} : vector<8x32xi32>
      %18 = vector.broadcast %5 : i32 to vector<8x32xi32>
      %19 = arith.addi %18, %17 : vector<8x32xi32>
      %c8_i32_9 = arith.constant 8 : i32
      %20 = vector.broadcast %c8_i32_9 : i32 to vector<8x32xi32>
      %21 = arith.cmpi slt, %19, %20 : vector<8x32xi32>
      %cst = arith.constant 0.000000e+00 : f32
      %22 = vector.broadcast %cst : f32 to vector<8x32xf32>
      %23 = arith.select %21, %16, %22 : vector<8x32xi1>, vector<8x32xf32>
      %c0_10 = arith.constant 0 : index
      %c0_11 = arith.constant 0 : index
      %24 = vector.load %arg4[%c0_10, %c0_11] : memref<1x32xf32, #tpu.memory_space<vmem>>, vector<1x32xf32>
      %cst_12 = arith.constant dense<0.000000e+00> : vector<32xf32>
      %25 = vector.multi_reduction <add>, %23, %cst_12 [0] : vector<8x32xf32> to vector<32xf32>
      %26 = vector.shape_cast %25 : vector<32xf32> to vector<1x32xf32>
      %27 = arith.addf %24, %26 : vector<1x32xf32>
      %c0_13 = arith.constant 0 : index
      %c0_14 = arith.constant 0 : index
      %28 = vector.load %arg4[%c0_13, %c0_14] : memref<1x32xf32, #tpu.memory_space<vmem>>, vector<1x32xf32>
      tpu.vector_store %arg4[%c0_13, %c0_14], %27 {strides = array<i32>} : memref<1x32xf32, #tpu.memory_space<vmem>>, vector<1x32xf32>,
    } else {
    }
    %c0_i32_6 = arith.constant 0 : i32
    %13 = arith.cmpi eq, %arg1, %c0_i32_6 : i32
    %14 = arith.extui %13 : i1 to i32
    %c0_i32_7 = arith.constant 0 : i32
    %15 = arith.cmpi ne, %14, %c0_i32_7 : i32
    scf.if %15 {
      %c0 = arith.constant 0 : index
      %c0_8 = arith.constant 0 : index
      %16 = vector.load %arg4[%c0, %c0_8] : memref<1x32xf32, #tpu.memory_space<vmem>>, vector<1x32xf32>
      %17 = vector.shape_cast %16 : vector<1x32xf32> to vector<1x1x32xf32>
      %c0_9 = arith.constant 0 : index
      %c0_10 = arith.constant 0 : index
      %c0_11 = arith.constant 0 : index
      %18 = vector.load %arg3[%c0_9, %c0_10, %c0_11] : memref<1x1x32xf32, #tpu.memory_space<vmem>>, vector<1x1x32xf32>
      tpu.vector_store %arg3[%c0_9, %c0_10, %c0_11], %17 {strides = array<i32>} : memref<1x1x32xf32, #tpu.memory_space<vmem>>, vector<1x1x32xf32>,
    } else {
    }
    return
  }
  func.func @transform_0(%arg0: i32, %arg1: i32) -> (i32, i32) {
    %c1_i32 = arith.constant 1 : i32
    %0 = arith.muli %arg0, %c1_i32 : i32
    %1 = arith.addi %0, %arg1 : i32
    %c0_i32 = arith.constant 0 : i32
    %2 = arith.minsi %1, %c0_i32 : i32
    %c0_i32_0 = arith.constant 0 : i32
    %c0_i32_1 = arith.constant 0 : i32
    return %2, %c0_i32_0 : i32, i32
  }
  func.func @transform_1(%arg0: i32, %arg1: i32) -> (i32, i32, i32) {
    %c0_i32 = arith.constant 0 : i32
    %c0_i32_0 = arith.constant 0 : i32
    %c0_i32_1 = arith.constant 0 : i32
    return %arg0, %c0_i32, %c0_i32_0 : i32, i32, i32
  }
}

</mosaic_0001>

<bundles_post_ra>
// kernel: tpu_custom_call.1
= control target key start
LH: loop header
LB: loop body
LE: loop exit
PB: predicated region body
PF: predicated region fallthrough
CT: control target
= control target key end

     0   :  { %6 = vsyncpa [#allocation4], 0  ;;  %s171_s0 = inlined_call_operand.hbm [shape: f32[8,32], index: 0, kind: input, shape index: {}]   ;;  %s172_s1 = inlined_call_operand.hbm [shape: f32[1,1,32], index: 1, kind: output, shape index: {}]  }
   0x1   :  { %7 = vsyncpa [#allocation5], 0  ;;  %s149_s6 = smov [#allocation3]  }
   0x2   :  { %s19_s7 = sshll.u32 %s149_s6, 4  ;;  %s20_s7 = int_to_ptr.vmem [resolvable:$true] %s19_s7 }
   0x3   :  { %s113_s8 = scalar_lea.vmem %s20_s7, 128  ;;  %p118_p1 = scmp.lt.s32.totalorder %s20_s7, %s20_s7 }
   0x4   :  { %p114_p0 = scmp.ne.s32.totalorder %s20_s7, %s113_s8  ;;  %p119_p2 = scmp.lt.s32.totalorder %s113_s8, %s113_s8 }
   0x6   :  { %p120_p3 = por %p119_p2, %p118_p1 }
   0x8   :  { %p121_p4 = pnand %p120_p3, %p114_p0 }
   0xa   :  { %124 = shalt.err (!%p121_p4)
}
   0xb   :  { %22 = dma.hbm_to_vmem [thread:$0]  %s171_s0, 128, %s20_s7, [#allocation4]  }
   0xc   :  { %145 = dma.done.wait [#allocation4], 128  }
   0xd   :  { %146 = vsyncadd [#allocation4], 4294967168  ;;  %vm33_vm0 = vcmask 253952   ;;  %v150_v0 = vmov 0.0   ;;  %vm45_vm1 = vcmask 261120   ;;  %v44_v1 = vld [vmem:[#allocation3] sm:$0xff] }
   0xe   :  { %34 = vst.msk [vmem:[#allocation2] sm:$0x1] %vm33_vm0, %v150_v0  ;;  %v46_v2 = vsel %vm45_vm1, %v44_v1, 0.0  ;;  %s151_s0 = smov [#allocation6]  }
   0xf   :  { %v47_v3 = vrot.slane %v46_v2, 4  ;;  %s91_s11 = sshll.u32 %s151_s0, 4  ;;  %s92_s11 = int_to_ptr.vmem [resolvable:$true] %s91_s11 }
  0x10   :  { %s125_s12 = scalar_lea.vmem %s92_s11, 16  ;;  %s129_s13 = scalar_lea.vmem %s92_s11, 32 }
  0x11   :  { %v48_v4 = vadd.f32 %v47_v3, %v46_v2  ;;  %p126_p5 = scmp.ne.s32.totalorder %s92_s11, %s125_s12  ;;  %p130_p6 = scmp.lt.s32.totalorder %s92_s11, %s92_s11 }
  0x12   :  { %p131_p7 = scmp.lt.s32.totalorder %s129_s13, %s125_s12 }
  0x13   :  { %v49_v5 = vrot.slane %v48_v4, 2 }
  0x14   :  { %p132_p8 = por %p131_p7, %p130_p6 }
  0x15   :  { %v50_v6 = vadd.f32 %v49_v5, %v48_v4  ;;  %v43_v8 = vld [vmem:[#allocation2] sm:$0x1] }
  0x16   :  { %p133_p9 = pnand %p132_p8, %p126_p5 }
  0x17   :  { %v51_v7 = vrot.slane %v50_v6, 1 }
  0x19   :  { %v52_v9 = vadd.f32 %v51_v7, %v50_v6 }
  0x1b   :  { %v53_v10 = vadd.f32 %v52_v9, %v43_v8 }
  0x1d   :  { %55 = vst.msk [vmem:[#allocation2] sm:$0x1] %vm33_vm0, %v53_v10 }
  0x24   :  { %v82_v11 = vld [vmem:[#allocation2] sm:$0x1] }
  0x25   :  { %84 = vst.msk [vmem:[#allocation6] sm:$0x1] %vm33_vm0, %v82_v11 }
  0x26   :  { %136 = shalt.err (!%p133_p9)
}
  0x27   :  { %94 = dma.vmem_to_hbm [thread:$0]  %s92_s11, 16, %s172_s1, [#allocation5]  }
  0x28   :  { %147 = dma.done.wait [#allocation5], 16  }
  0x29   :  { %148 = vsyncadd [#allocation5], 4294967280 }
  0x2a   :  { %98 = vsyncpa [#allocation4], 1 }
  0x2b   :  { %99 = vsyncpa [#allocation5], 1 }

</bundles_post_ra>
